<compile_context>
chip_gen: v5e
topology: v5e:2x2
jax: 0.10.0
libtpu: 0.0.40
codegen_flags: <defaults>
</compile_context>

<pallas_src>
import jax
import jax.numpy as jnp
from jax.experimental import pallas as pl
from jax.experimental.pallas import tpu as pltpu

B = 2
N_PATCH = 128          # patch tokens per image (B*N >= dino_dim so the whitening is full-rank)
DINO_DIM = 256         # patch embedding dim == whitening out_dim (384 in real DINOv2 ViT-S)
NUM_CLASSES = 10
LOGIT_PAD = 128        # lane-dense logits slab; sliced to NUM_CLASSES in the wrapper
ROW_TILE = 128         # rows of (B*N, D) per grid step (512 at production sizes)


# ----------------------------- fused Pallas kernel -----------------------------

def _fused_whitening_head_kernel(x_ref, ww_ref, wb_ref, pool_ref, hw_ref, hb_ref,
                                 whit_ref, plog_ref):
    # x_ref:   (TR, D)        bf16   row tile of flattened patches
    # ww_ref:  (D, D_out)     bf16   pre-transposed whitening weight
    # wb_ref:  (1, D_out)     f32    whitening bias
    # pool_ref:(B, TR)        bf16   this tile's columns of the 1/N pooling matrix
    # hw_ref:  (D, LOGIT_PAD) bf16   head weight folded through the whitening
    # hb_ref:  (1, LOGIT_PAD) f32    head bias folded through the whitening
    # whit_ref:(TR, D_out)    bf16   whitened row tile
    # plog_ref:(B, LOGIT_PAD) f32    partial logits for this row tile (leading dim squeezed)
    x = x_ref[...]

    # Whitening linear: bf16 MXU operands, f32 accumulation, f32 bias add, single bf16 cast.
    whit = jnp.dot(x, ww_ref[...], preferred_element_type=jnp.float32) + wb_ref[...]
    whit_ref[...] = whit.astype(whit_ref.dtype)

    # Inner head, folded through the whitening: partial logits from the *raw* patch tile so
    # this MXU chain does not wait on the whitening result.
    pooled = jnp.dot(pool_ref[...], x, preferred_element_type=jnp.float32)       # (B, D) f32
    part = jnp.dot(pooled.astype(hw_ref.dtype), hw_ref[...],
                   preferred_element_type=jnp.float32)                            # (B, 128) f32
    # Add the (folded) bias exactly once: only on the first row tile.
    first = (pl.program_id(0) == 0).astype(jnp.float32)
    plog_ref[...] = part + first * hb_ref[...]


def fused_whitening_head(patches_flat, ww_t, wb2d, pool_mat, hw_eff, hb_eff, *,
                         row_tile=ROW_TILE):
    """patches_flat: (B*N, D) bf16; ww_t: (D, D_out) bf16; wb2d: (1, D_out) f32;
    pool_mat: (B, B*N) bf16 (1/N folded in); hw_eff: (D, LOGIT_PAD) bf16; hb_eff: (1, LOGIT_PAD)
    f32 -> (whitened (B*N, D_out) bf16, partial logits (num_tiles, B, LOGIT_PAD) f32)."""
    rows, d = patches_flat.shape
    d_out = ww_t.shape[1]
    b = pool_mat.shape[0]
    num_tiles = rows // row_tile

    return pl.pallas_call(
        _fused_whitening_head_kernel,
        out_shape=(
            jax.ShapeDtypeStruct((rows, d_out), patches_flat.dtype),
            jax.ShapeDtypeStruct((num_tiles, b, LOGIT_PAD), jnp.float32),
        ),
        grid=(num_tiles,),
        in_specs=[
            pl.BlockSpec((row_tile, d), lambda i: (i, 0)),       # patches row tile
            pl.BlockSpec((d, d_out), lambda i: (0, 0)),          # whitening weight (resident)
            pl.BlockSpec((1, d_out), lambda i: (0, 0)),          # whitening bias (resident)
            pl.BlockSpec((b, row_tile), lambda i: (0, i)),       # pooling matrix columns
            pl.BlockSpec((d, LOGIT_PAD), lambda i: (0, 0)),      # folded head weight (resident)
            pl.BlockSpec((1, LOGIT_PAD), lambda i: (0, 0)),      # folded head bias (resident)
        ],
        out_specs=(
            pl.BlockSpec((row_tile, d_out), lambda i: (i, 0)),   # whitened row tile
            pl.BlockSpec((None, b, LOGIT_PAD), lambda i: (i, 0, 0)),  # per-tile partial logits
        ),
        compiler_params=pltpu.CompilerParams(
            # Each grid step touches disjoint output blocks -> fully parallel (v7x: both TCs).
            dimension_semantics=("parallel",),
            # Explicit scoped-VMEM budget; ~1 MiB used here, headroom for production row tiles.
            vmem_limit_bytes=32 * 1024 * 1024,
        ),
    )(patches_flat, ww_t, wb2d, pool_mat, hw_eff, hb_eff)


# ----------------------------- whitening construction (lazy init) -----------------------------

def make_whitening_linear(embs, out_dim=None):
    """JAX port of make_whitening_linear: returns (weight (out_dim, D_in), bias (out_dim,))."""
    # TODO(synk): SVD has no Pallas equivalent; this one-time lazy-init setup runs in plain JAX.
    if out_dim is None:
        out_dim = embs.shape[-1]
    embs_demean = embs - jnp.mean(embs, axis=0, keepdims=True)
    _u, _s, vT = jnp.linalg.svd(embs_demean, full_matrices=False)
    weight = vT[:out_dim]                                 # rows of V^T
    bias = -jnp.mean(embs @ weight.T, axis=0)             # == -F.linear(embs, weight).mean(0)
    return weight, bias


def prepare_weights(w, bias, head_w, head_b, n_patch):
    """Fold the inner head through the whitening and lay everything out for the kernel."""
    d_out, d_in = w.shape
    ww_t = jnp.asarray(w).T.astype(jnp.bfloat16)                       # (D, D_out)
    wb2d = jnp.asarray(bias).reshape(1, -1).astype(jnp.float32)        # (1, D_out)

    hw_pad = jnp.zeros((d_out, LOGIT_PAD), jnp.float32).at[:, :NUM_CLASSES].set(head_w)
    hb_pad = jnp.zeros((1, LOGIT_PAD), jnp.float32).at[0, :NUM_CLASSES].set(head_b)

    # logits = mean_n(whit) @ H + hb = mean_n(x) @ (W^T H) + (b H + hb)
    hw_eff = (jnp.asarray(w).T @ hw_pad).astype(jnp.bfloat16)          # (D, LOGIT_PAD)
    hb_eff = (wb2d @ hw_pad + hb_pad).astype(jnp.float32)              # (1, LOGIT_PAD)

    # Pooling matrix with 1/N folded in: pool_mat[b, b*N + n] = 1/N  (1/128 is exact in bf16).
    pool_mat = (jnp.repeat(jnp.eye(B, dtype=jnp.float32), n_patch, axis=1)
                / n_patch).astype(jnp.bfloat16)                         # (B, B*N)
    return ww_t, wb2d, pool_mat, hw_eff, hb_eff


# ----------------------------- forward pass -----------------------------

@jax.jit
def whitening_wrapper_forward(dino_output, ww_t, wb2d, pool_mat, hw_eff, hb_eff):
    """Returns (inner-head logits, dino_output with whitened 'x_norm_patchtokens')."""
    patches = dino_output["x_norm_patchtokens"]                         # (B, N, D) bf16
    b, n, d = patches.shape
    patches_flat = patches.reshape(b * n, d)                            # free on HBM

    whit_flat, plog = fused_whitening_head(patches_flat, ww_t, wb2d, pool_mat, hw_eff, hb_eff)

    out = dict(dino_output)
    out["x_norm_patchtokens"] = whit_flat.reshape(b, n, -1)
    logits = jnp.sum(plog, axis=0)[:, :NUM_CLASSES]   # tiny (tiles, B, 128) partial-sum + slice
    return logits, out


# ----------------------------- main -----------------------------

if __name__ == "__main__":
    key = jax.random.PRNGKey(0)
    k_patch, k_cls, k_head, k_hbias = jax.random.split(key, 4)

    # Producer (DINO backbone) emits bf16 activations.
    patches = jax.random.normal(
        k_patch, (B, N_PATCH, DINO_DIM), dtype=jnp.float32).astype(jnp.bfloat16)
    dino_output = {
        "x_norm_clstoken": jax.random.normal(k_cls, (B, DINO_DIM), jnp.float32).astype(
            jnp.bfloat16),
        "x_norm_patchtokens": patches,
    }

    # Lazy whitening creation from this batch's patch tokens (reference first-call semantics).
    patches_f32 = patches.astype(jnp.float32)
    w, bias = make_whitening_linear(patches_f32.reshape(-1, DINO_DIM), out_dim=DINO_DIM)

    # Inner head params (mean-pool + linear classifier).
    head_w = 0.02 * jax.random.normal(k_head, (DINO_DIM, NUM_CLASSES), dtype=jnp.float32)
    head_b = 0.01 * jax.random.normal(k_hbias, (NUM_CLASSES,), dtype=jnp.float32)

    ww_t, wb2d, pool_mat, hw_eff, hb_eff = prepare_weights(w, bias, head_w, head_b, N_PATCH)

    logits, out = whitening_wrapper_forward(dino_output, ww_t, wb2d, pool_mat, hw_eff, hb_eff)
    jax.block_until_ready((logits, out))

    # Pure-JAX f32 reference of the module forward (tolerances sized for the bf16-I/O path).
    ref_whit = patches_f32 @ w.T + bias
    ref_logits = ref_whit.mean(axis=1) @ head_w + head_b
    assert logits.shape == (B, NUM_CLASSES)
    assert out["x_norm_patchtokens"].shape == (B, N_PATCH, DINO_DIM)
    assert out["x_norm_patchtokens"].dtype == jnp.bfloat16
    assert jnp.allclose(out["x_norm_patchtokens"].astype(jnp.float32), ref_whit,
                        atol=2e-2, rtol=2e-2)
    assert jnp.allclose(logits, ref_logits, atol=2e-2, rtol=2e-2)

    print("KERNEL_OK")
</pallas_src>

<mosaic_0001>
module attributes {stable_mosaic.version = 11 : i64} {
  func.func @_fused_whitening_head_kernel(%arg0: i32, %arg1: memref<128x256xbf16, #tpu.memory_space<vmem>>, %arg2: memref<256x256xbf16, #tpu.memory_space<vmem>>, %arg3: memref<1x256xf32, #tpu.memory_space<vmem>>, %arg4: memref<2x128xbf16, #tpu.memory_space<vmem>>, %arg5: memref<256x128xbf16, #tpu.memory_space<vmem>>, %arg6: memref<1x128xf32, #tpu.memory_space<vmem>>, %arg7: memref<128x256xbf16, #tpu.memory_space<vmem>>, %arg8: memref<1x2x128xf32, #tpu.memory_space<vmem>>) attributes {dimension_semantics = [#tpu.dimension_semantics<parallel>], iteration_bounds = array<i64: 2>, scalar_prefetch = 0 : i64, scratch_operands = 0 : i64, tpu.core_type = #tpu.core_type<tc>, window_params = [{transform_indices = @transform_0, window_bounds = array<i64: 128, 256>}, {pipeline_mode = #tpu.pipeline_mode<synchronous>, transform_indices = @transform_1, window_bounds = array<i64: 256, 256>}, {pipeline_mode = #tpu.pipeline_mode<synchronous>, transform_indices = @transform_2, window_bounds = array<i64: 1, 256>}, {transform_indices = @transform_3, window_bounds = array<i64: 2, 128>}, {pipeline_mode = #tpu.pipeline_mode<synchronous>, transform_indices = @transform_4, window_bounds = array<i64: 256, 128>}, {pipeline_mode = #tpu.pipeline_mode<synchronous>, transform_indices = @transform_5, window_bounds = array<i64: 1, 128>}, {transform_indices = @transform_6, window_bounds = array<i64: 128, 256>}, {transform_indices = @transform_7, window_bounds = array<i64: 1, 2, 128>}]} {
    %c0 = arith.constant 0 : index
    %c0_0 = arith.constant 0 : index
    %0 = vector.load %arg1[%c0, %c0_0] : memref<128x256xbf16, #tpu.memory_space<vmem>>, vector<128x256xbf16>
    %c0_1 = arith.constant 0 : index
    %c0_2 = arith.constant 0 : index
    %1 = vector.load %arg2[%c0_1, %c0_2] : memref<256x256xbf16, #tpu.memory_space<vmem>>, vector<256x256xbf16>
    %cst = arith.constant dense<0.000000e+00> : vector<128x256xf32>
    %2 = tpu.matmul %0, %1, %cst {dimension_numbers = #tpu.dot_dimension_numbers<[1], [0], [0], [1], [0, 0, 1, 1], [], []>} : vector<128x256xbf16>, vector<256x256xbf16>, vector<128x256xf32> -> vector<128x256xf32>
    %c0_3 = arith.constant 0 : index
    %c0_4 = arith.constant 0 : index
    %3 = vector.load %arg3[%c0_3, %c0_4] : memref<1x256xf32, #tpu.memory_space<vmem>>, vector<1x256xf32>
    %4 = vector.broadcast %3 : vector<1x256xf32> to vector<128x256xf32>
    %5 = arith.addf %2, %4 : vector<128x256xf32>
    %6 = arith.truncf %5 : vector<128x256xf32> to vector<128x256xbf16>
    %c0_5 = arith.constant 0 : index
    %c0_6 = arith.constant 0 : index
    %7 = vector.load %arg7[%c0_5, %c0_6] : memref<128x256xbf16, #tpu.memory_space<vmem>>, vector<128x256xbf16>
    tpu.vector_store %arg7[%c0_5, %c0_6], %6 {strides = array<i32>} : memref<128x256xbf16, #tpu.memory_space<vmem>>, vector<128x256xbf16>,
    %c0_7 = arith.constant 0 : index
    %c0_8 = arith.constant 0 : index
    %8 = vector.load %arg4[%c0_7, %c0_8] : memref<2x128xbf16, #tpu.memory_space<vmem>>, vector<2x128xbf16>
    %cst_9 = arith.constant dense<0.000000e+00> : vector<2x256xf32>
    %9 = tpu.matmul %8, %0, %cst_9 {dimension_numbers = #tpu.dot_dimension_numbers<[1], [0], [0], [1], [0, 0, 1, 1], [], []>} : vector<2x128xbf16>, vector<128x256xbf16>, vector<2x256xf32> -> vector<2x256xf32>
    %10 = arith.truncf %9 : vector<2x256xf32> to vector<2x256xbf16>
    %c0_10 = arith.constant 0 : index
    %c0_11 = arith.constant 0 : index
    %11 = vector.load %arg5[%c0_10, %c0_11] : memref<256x128xbf16, #tpu.memory_space<vmem>>, vector<256x128xbf16>
    %cst_12 = arith.constant dense<0.000000e+00> : vector<2x128xf32>
    %12 = tpu.matmul %10, %11, %cst_12 {dimension_numbers = #tpu.dot_dimension_numbers<[1], [0], [0], [1], [0, 0, 1, 1], [], []>} : vector<2x256xbf16>, vector<256x128xbf16>, vector<2x128xf32> -> vector<2x128xf32>
    %c0_i32 = arith.constant 0 : i32
    %13 = arith.cmpi eq, %arg0, %c0_i32 : i32
    %14 = arith.extui %13 : i1 to i32
    %15 = arith.sitofp %14 : i32 to f32
    %c0_13 = arith.constant 0 : index
    %c0_14 = arith.constant 0 : index
    %16 = vector.load %arg6[%c0_13, %c0_14] : memref<1x128xf32, #tpu.memory_space<vmem>>, vector<1x128xf32>
    %17 = vector.broadcast %15 : f32 to vector<1x128xf32>
    %18 = arith.mulf %17, %16 : vector<1x128xf32>
    %19 = vector.broadcast %18 : vector<1x128xf32> to vector<2x128xf32>
    %20 = arith.addf %12, %19 : vector<2x128xf32>
    %c0_15 = arith.constant 0 : index
    %c0_16 = arith.constant 0 : index
    %c0_17 = arith.constant 0 : index
    %21 = vector.load %arg8[%c0_15, %c0_16, %c0_17] : memref<1x2x128xf32, #tpu.memory_space<vmem>>, vector<1x2x128xf32>
    %22 = vector.shape_cast %21 : vector<1x2x128xf32> to vector<2x128xf32>
    %23 = vector.shape_cast %20 : vector<2x128xf32> to vector<1x2x128xf32>
    tpu.vector_store %arg8[%c0_15, %c0_16, %c0_17], %23 {strides = array<i32>} : memref<1x2x128xf32, #tpu.memory_space<vmem>>, vector<1x2x128xf32>,
    return
  }
  func.func @transform_0(%arg0: i32) -> (i32, i32) {
    %c0_i32 = arith.constant 0 : i32
    %c0_i32_0 = arith.constant 0 : i32
    return %arg0, %c0_i32 : i32, i32
  }
  func.func @transform_1(%arg0: i32) -> (i32, i32) {
    %c0_i32 = arith.constant 0 : i32
    %c0_i32_0 = arith.constant 0 : i32
    %c0_i32_1 = arith.constant 0 : i32
    return %c0_i32, %c0_i32_0 : i32, i32
  }
  func.func @transform_2(%arg0: i32) -> (i32, i32) {
    %c0_i32 = arith.constant 0 : i32
    %c0_i32_0 = arith.constant 0 : i32
    %c0_i32_1 = arith.constant 0 : i32
    return %c0_i32, %c0_i32_0 : i32, i32
  }
  func.func @transform_3(%arg0: i32) -> (i32, i32) {
    %c0_i32 = arith.constant 0 : i32
    %c0_i32_0 = arith.constant 0 : i32
    return %c0_i32, %arg0 : i32, i32
  }
  func.func @transform_4(%arg0: i32) -> (i32, i32) {
    %c0_i32 = arith.constant 0 : i32
    %c0_i32_0 = arith.constant 0 : i32
    %c0_i32_1 = arith.constant 0 : i32
    return %c0_i32, %c0_i32_0 : i32, i32
  }
  func.func @transform_5(%arg0: i32) -> (i32, i32) {
    %c0_i32 = arith.constant 0 : i32
    %c0_i32_0 = arith.constant 0 : i32
    %c0_i32_1 = arith.constant 0 : i32
    return %c0_i32, %c0_i32_0 : i32, i32
  }
  func.func @transform_6(%arg0: i32) -> (i32, i32) {
    %c0_i32 = arith.constant 0 : i32
    %c0_i32_0 = arith.constant 0 : i32
    return %arg0, %c0_i32 : i32, i32
  }
  func.func @transform_7(%arg0: i32) -> (i32, i32, i32) {
    %c0_i32 = arith.constant 0 : i32
    %c0_i32_0 = arith.constant 0 : i32
    %c0_i32_1 = arith.constant 0 : i32
    return %arg0, %c0_i32, %c0_i32_0 : i32, i32, i32
  }
}

</mosaic_0001>

<bundles_post_ra>
// kernel: whitening_wrapper_forward.1
= control target key start
LH: loop header
LB: loop body
LE: loop exit
PB: predicated region body
PF: predicated region fallthrough
CT: control target
= control target key end

     0   :  { %s2251_s0 = inlined_call_operand.hbm [shape: bf16[256,256], index: 0, kind: input, shape index: {}]   ;;  %s2252_s1 = inlined_call_operand.hbm [shape: bf16[256,256], index: 1, kind: input, shape index: {}]   ;;  %s2253_s2 = inlined_call_operand.vmem [shape: f32[1,256], index: 2, kind: input, shape index: {}]   ;;  %s2254_s3 = inlined_call_operand.hbm [shape: bf16[2,256], index: 3, kind: input, shape index: {}]   ;;  %s2255_s4 = inlined_call_operand.hbm [shape: bf16[256,128], index: 4, kind: input, shape index: {}]   ;;  %s2256_s5 = inlined_call_operand.vmem [shape: f32[1,128], index: 5, kind: input, shape index: {}]   ;;  %s2257_s6 = inlined_call_operand.hbm [shape: bf16[256,256], index: 6, kind: output, shape index: {0}]   ;;  %s2258_s7 = inlined_call_operand.vmem [shape: f32[2,2,128], index: 7, kind: output, shape index: {1}]  }
   0x1   :  { %2267 = sst [smem:[#allocation19_spill]] %s2251_s0 }
   0x2   :  { %2268 = sst [smem:[#allocation20_spill]] %s2252_s1 }
   0x3   :  { %2269 = sst [smem:[#allocation21_spill]] %s2255_s4 }
   0x4   :  { %2270 = sst [smem:[#allocation22_spill]] %s2258_s7 }
   0x5   :  { %13 = vsyncpa [#allocation3], 0 }
   0x6   :  { %15 = vsyncpa [#allocation3 + $0x1], 0 }
   0x7   :  { %16 = vsyncpa [#allocation6], 0 }
   0x8   :  { %17 = vsyncpa [#allocation4], 0 }
   0x9   :  { %19 = vsyncpa [#allocation4 + $0x1], 0  ;;  %s1920_s24 = smov 0   ;;  %s1922_s25 = smov 0  }
   0xa   :  { %s1924_s26 = smov 0   ;;  %s1926_s27 = smov 0  }
   0xb LB: > { %2271 = sst [smem:[#allocation15_spill]] %s1858_s24  ;;  %s1941_s28 = sadd.s32 4294967295, %s1870_s27   ;;  %s1870_s27 = sphi %s1926_s27, %s2296_s27   ;;  %s1866_s26 = sphi %s1924_s26, %s2300_s26   ;;  %s1862_s25 = sphi %s1922_s25, %s2299_s25   ;;  %s1858_s24 = sphi %s1920_s24, %s2298_s24  }
   0xc   : > { %s1249_s29 = sadd.s32 4294967294, %s1870_s27   ;;  %p45_p0 = scmp.ne.s32.totalorder %s1862_s25, %s1858_s24 }
   0xd   : > { %p2264_p1 = scmp.eq.s32.totalorder %s1941_s28, 0  ;;  %p179_p2 = scmp.eq.s32.totalorder %s1941_s28, 1 }
   0xe   : > { %p185_p3 = scmp.eq.s32.totalorder %s1249_s29, 1  ;;  %p1250_p5 = scmp.ge.s32.totalorder %s1870_s27, 1 }
   0xf   : > { %p1950_p4 = por %p2264_p1, %p45_p0  ;;  %p218_p7 = scmp.lt.s32.totalorder %s1870_s27, 3 }
  0x10   : > { %p1955_p6 = por %p185_p3, %p45_p0  ;;  %s2275_s1 = sld [smem:[#allocation20_spill]] }
  0x11   : > { %p1963_p8 = pnand %p1250_p5, %p218_p7  ;;  %s1872_s13 = smov [#allocation5]  }
  0x12   : > { %s2273_s8 = scalar_select %p1955_p6, 1, 0 }
  0x13   : > { %p1608_p9 = pneg %p1963_p8  ;;  %s231_s14 = sshll.u32 %s1872_s13, 4  ;;  %s232_s14 = int_to_ptr.vmem [resolvable:$true] %s231_s14 }
  0x14   : > { %2274 = sst [smem:[#allocation16_spill]] %s2273_s8  ;;  %s1977_s16 = sadd.s32 1, %s1870_s27  }
  0x15   : > { %p1971_p10 = pnand %p1608_p9, %p2264_p1  ;;  %2278 = sst [smem:[#allocation17_spill]] %s1977_s16 }
  0x16   : > { %s229_s11 = sshll.u32 %s2275_s1, 4  ;;  %s2259_s17 = smov 128   ;;  %s230_s11 = int_to_ptr.hbm [resolvable:$true] %s229_s11 }
  0x17   : > { %s2260_s18 = smov 8   ;;  %s29_s19 = ssub.s32 %s1870_s27, %s1977_s16 }
  0x18   : > { %1611 = dma.hbm_to_vmem [thread:$0]  (!%p1971_p10), %s230_s11, 4096, %s232_s14, [#allocation6], %s2259_s17, %s2259_s17, %s2260_s18  }
  0x19   : > { %s32_s20 = sadd.s32 1, %s1866_s26  ;;  %p30_p12 = scmp.eq.s32.totalorder %s29_s19, 0 }
  0x1a   : > { %p39_p13 = scmp.ne.s32.totalorder %s1866_s26, %s1862_s25  ;;  %p40_p0 = scmp.eq.s32.totalorder %s1870_s27, 0 }
  0x1b   : > { %p1628_p3 = scmp.lt.s32.totalorder %s1870_s27, 2  ;;  %s265_s23 = sand.u32 1, %s1870_s27  }
  0x1c   : > { %s1992_s21 = scalar_select %p30_p12, %s1866_s26, %s32_s20  }
  0x1d   : > { %p41_p5 = por %p40_p0, %p39_p13  ;;  %p1996_p7 = por %p179_p2, %p39_p13 }
  0x1e   : > { %2279 = sst [smem:[#allocation18_spill]] %s1992_s21  ;;  %s2261_s29 = sand.u32 1, %s1866_s26  }
  0x1f   : > { %s1254_s9 = sshll.u32 %s2261_s29, 7  ;;  %s1527_s10 = sshll.u32 %s1870_s27, 7 }
  0x20   : > { %s2281_s0 = sld [smem:[#allocation19_spill]]  ;;  %s269_s19 = scalar_lea.vmem [#allocation2], %s1254_s9 }
  0x21   : > { %s278_s17 = sshll.u32 %s269_s19, 4  ;;  %p2010_p9 = pnand %p1628_p3, %p41_p5  ;;  %s279_s17 = int_to_ptr.vmem [resolvable:$true] %s278_s17 }
  0x22   : > { %s2283_s4 = sld [smem:[#allocation21_spill]]  ;;  %s2017_s16 = scalar_lea.sflag [#allocation3], %s265_s23 }
  0x23   : > { %p1706_p12 = pneg %p2010_p9 }
  0x26   : > { %s275_s14 = scalar_lea.hbm %s2281_s0, %s1527_s10  ;;  %s1709_s1 = scalar_lea.hbm %s2281_s0, 256 }
  0x27   : > { %s276_s18 = sshll.u32 %s275_s14, 4  ;;  %s277_s18 = int_to_ptr.hbm [resolvable:$true] %s276_s18 }
  0x28   : > { %s246_s29 = sshll.u32 %s2283_s4, 4  ;;  %s1702_s10 = sshra.s32 %s277_s18, 4  ;;  %s247_s29 = int_to_ptr.hbm [resolvable:$true] %s246_s29  ;;  %s1703_s10 = int_to_ptr.hbm [resolvable:$true] %s1702_s10 }
  0x29   : > { %s1704_s9 = scalar_lea.hbm %s1703_s10, 128  ;;  %p1710_p3 = scmp.lt.s32.totalorder %s1703_s10, %s2281_s0 }
  0x2a   : > { %p1705_p2 = scmp.ne.s32.totalorder %s1703_s10, %s1704_s9  ;;  %p1711_p5 = scmp.lt.s32.totalorder %s1709_s1, %s1704_s9 }
  0x2c   : > { %p1707_p13 = pnand %p1706_p12, %p1705_p2  ;;  %p1712_p11 = por %p1711_p5, %p1710_p3 }
  0x2e   : > { %p1708_p0 = pneg %p1707_p13 }
  0x30   : > { %p1713_p1 = pnand %p1712_p11, %p1708_p0 }
  0x32   : > { %1716 = shalt.err (!%p1713_p1)
}
  0x33   : > { %s2284_s23 = smov 8   ;;  %s2285_s19 = smov 128  }
  0x34   : > { %1618 = dma.hbm_to_vmem [thread:$0]  (!%p2010_p9), %s277_s18, 2048, %s279_s17, %s2017_s16, %s2285_s19, %s2285_s19, %s2284_s23  }
  0x35   : > { %s1875_s11 = smov [#allocation8]   ;;  %s1876_s21 = smov 64  }
  0x36   : > { %s248_s13 = sshll.u32 %s1875_s11, 4  ;;  %s1877_s10 = smov 4   ;;  %s249_s13 = int_to_ptr.vmem [resolvable:$true] %s248_s13 }
  0x37   : > { %1614 = dma.hbm_to_vmem [thread:$0]  (!%p1971_p10), %s247_s29, 2048, %s249_s13, [#allocation6], %s1876_s21, %s1876_s21, %s1877_s10  }
  0x38   : > { %s294_s14 = scalar_lea.hbm %s2254_s3, %s1870_s27  ;;  %s2286_s4 = sand.u32 1, %s1866_s26  }
  0x39   : > { %s296_s0 = sshll.u32 %s294_s14, 4  ;;  %s291_s8 = scalar_lea.vmem [#allocation7], %s2286_s4  ;;  %s297_s0 = int_to_ptr.hbm [resolvable:$true] %s296_s0 }
  0x3a   : > { %s298_s24 = sshll.u32 %s291_s8, 4  ;;  %s1762_s7 = sshra.s32 %s297_s0, 4  ;;  %s299_s24 = int_to_ptr.vmem [resolvable:$true] %s298_s24  ;;  %s1763_s7 = int_to_ptr.hbm [resolvable:$true] %s1762_s7 }
  0x3b   : > { %s1764_s17 = scalar_lea.hbm %s1763_s7, 1  ;;  %s1769_s29 = scalar_lea.hbm %s2254_s3, 2 }
  0x3c   : > { %p1765_p1 = scmp.ne.s32.totalorder %s1763_s7, %s1764_s17  ;;  %p1770_p10 = scmp.lt.s32.totalorder %s1763_s7, %s2254_s3 }
  0x3d   : > { %p1771_p13 = scmp.lt.s32.totalorder %s1769_s29, %s1764_s17 }
  0x3e   : > { %p1767_p11 = pnand %p1765_p1, %p1706_p12 }
  0x3f   : > { %p1772_p0 = por %p1771_p13, %p1770_p10 }
  0x40   : > { %p1768_p2 = pneg %p1767_p11 }
  0x42   : > { %p1773_p3 = pnand %p1772_p0, %p1768_p2 }
  0x44   : > { %1776 = shalt.err (!%p1773_p3)
}
  0x45   : > { %1621 = dma.hbm_to_vmem [thread:$0]  (!%p2010_p9), %s297_s0, 16, %s299_s24, %s2017_s16  }
  0x46   : > { %307 = sbr.rel (%p1963_p8) target bundleno = 516 (0x204), region = 44  ;;  %s309_s4 = sand.u32 (!%p1963_p8), 1, %s1941_s28  }
  0x47   : > { %s2060_s8 = sand.u32 (!%p1963_p8), 1, %s1862_s25   ;;  %s310_s11 = scalar_lea.sflag (!%p1963_p8), [#allocation3], %s309_s4 }
  0x48   : > { %s1259_s7 = sshll.u32 (!%p1963_p8), %s2060_s8, 7 }
  0x49   : > { %s2065_s13 = scalar_lea.vmem (!%p1963_p8), [#allocation2], %s1259_s7 }
  0x4b   : > { %1837 = dma.done.wait (%p1950_p4), %s310_s11, 2048  }
  0x4c   : > { %1839 = vsyncadd (%p1950_p4), %s310_s11, 4294965248  ;;  %p2287_p8 = scmp.eq.s32.totalorder %s1941_s28, 0 }
  0x4e   : > { %1841 = dma.done.wait (%p2287_p8), [#allocation6], 4096   ;;  %p2288_p9 = pmov %p2287_p8 }
  0x4f   : > { %s327_s0 = scalar_lea.vmem [#allocation7], %s2060_s8 }
  0x50   : > { %1843 = vsyncadd (%p2288_p9), [#allocation6], 4294963200 }
  0x51   : > { %1845 = dma.done.wait (%p1950_p4), %s310_s11, 16  }
  0x52   : > { %1847 = vsyncadd (%p1950_p4), %s310_s11, 4294967280  ;;  %p2289_p12 = pmov %p2287_p8 }
  0x53   : > { %p2290_p5 = pmov %p2287_p8 }
  0x54   : > { %1849 = dma.done.wait (%p2289_p12), [#allocation6], 2048  }
  0x55   : > { %1851 = vsyncadd (%p2290_p5), [#allocation6], 4294965248  ;;  %v1386_v0 = vld [vmem:[#allocation5 + $0x70] sm:$0xf]  ;;  %v1559_v1 = vld [vmem:[#allocation5 + $0x74] sm:$0xf0] }
  0x56   : > { %v1450_v2 = vld [vmem:[#allocation5 + $0xf0] sm:$0xf]  ;;  %v1387_v3 = vor.u32 %v1559_v1, %v1386_v0  ;;  %v1575_v4 = vld [vmem:[#allocation5 + $0xf4] sm:$0xf0]  ;;  %v1558_v5 = vld [vmem:[#allocation5 + $0x74] sm:$0xf] }
  0x57   : > { %v1388_v6 = vld [vmem:[#allocation5 + $0x78] sm:$0xf0]  ;;  %v1451_v7 = vor.u32 %v1575_v4, %v1450_v2  ;;  %v1574_v9 = vld [vmem:[#allocation5 + $0xf4] sm:$0xf]  ;;  %v1378_v11 = vld [vmem:[#allocation5 + $0x60] sm:$0xf] }
  0x58   : > { %v1391_v8 = vor.u32 %v1558_v5, %v1388_v6  ;;  %v1452_v10 = vld [vmem:[#allocation5 + $0xf8] sm:$0xf0]  ;;  %672 = vmatpush.bf16.msra.mxu0 %v1387_v3  ;;  %v1557_v13 = vld [vmem:[#allocation5 + $0x64] sm:$0xf0]  ;;  %v1442_v14 = vld [vmem:[#allocation5 + $0xe0] sm:$0xf] }
  0x59   : > { %v1455_v12 = vor.u32 %v1574_v9, %v1452_v10  ;;  %v1573_v15 = vld [vmem:[#allocation5 + $0xe4] sm:$0xf0]  ;;  %721 = vmatpush.bf16.msra.mxu1 %v1451_v7  ;;  %v1379_v16 = vor.u32 %v1557_v13, %v1378_v11  ;;  %v1556_v18 = vld [vmem:[#allocation5 + $0x64] sm:$0xf]  ;;  %v1380_v19 = vld [vmem:[#allocation5 + $0x68] sm:$0xf0] }
  0x5a   : > { %770 = vmatpush.bf16.msra.mxu2 %v1391_v8  ;;  %v1443_v17 = vor.u32 %v1573_v15, %v1442_v14  ;;  %v1572_v20 = vld [vmem:[#allocation5 + $0xe4] sm:$0xf]  ;;  %v1383_v21 = vor.u32 %v1556_v18, %v1380_v19  ;;  %v1444_v22 = vld [vmem:[#allocation5 + $0xe8] sm:$0xf0]  ;;  %v1370_v23 = vld [vmem:[#allocation5 + $0x50] sm:$0xf] }
  0x5b   : > { %819 = vmatpush.bf16.msra.mxu3 %v1455_v12  ;;  %v1555_v24 = vld [vmem:[#allocation5 + $0x54] sm:$0xf0]  ;;  %v1447_v25 = vor.u32 %v1572_v20, %v1444_v22  ;;  %v1434_v26 = vld [vmem:[#allocation5 + $0xd0] sm:$0xf]  ;;  %v1554_v28 = vld [vmem:[#allocation5 + $0x54] sm:$0xf] }
  0x5c   : > { %v1571_v27 = vld [vmem:[#allocation5 + $0xd4] sm:$0xf0]  ;;  %673 = vmatpush.bf16.msra.mxu0 %v1379_v16  ;;  %v1371_v29 = vor.u32 %v1555_v24, %v1370_v23  ;;  %v1372_v30 = vld [vmem:[#allocation5 + $0x58] sm:$0xf0]  ;;  %v1570_v31 = vld [vmem:[#allocation5 + $0xd4] sm:$0xf] }
  0x5d   : > { %v1436_v32 = vld [vmem:[#allocation5 + $0xd8] sm:$0xf0]  ;;  %722 = vmatpush.bf16.msra.mxu1 %v1443_v17  ;;  %v1435_v33 = vor.u32 %v1571_v27, %v1434_v26  ;;  %v1375_v34 = vor.u32 %v1554_v28, %v1372_v30  ;;  %v1362_v35 = vld [vmem:[#allocation5 + $0x40] sm:$0xf]  ;;  %v1553_v36 = vld [vmem:[#allocation5 + $0x44] sm:$0xf0] }
  0x5e   : > { %771 = vmatpush.bf16.msra.mxu2 %v1383_v21  ;;  %v1426_v37 = vld [vmem:[#allocation5 + $0xc0] sm:$0xf]  ;;  %v1439_v38 = vor.u32 %v1570_v31, %v1436_v32  ;;  %v1569_v39 = vld [vmem:[#allocation5 + $0xc4] sm:$0xf0]  ;;  %v1552_v40 = vld [vmem:[#allocation5 + $0x44] sm:$0xf]  ;;  %v1363_v44 = vor.u32 %v1553_v36, %v1362_v35 }
  0x5f   : > { %820 = vmatpush.bf16.msra.mxu3 %v1447_v25  ;;  %v1364_v41 = vld [vmem:[#allocation5 + $0x48] sm:$0xf0]  ;;  %v1568_v42 = vld [vmem:[#allocation5 + $0xc4] sm:$0xf]  ;;  %v1427_v45 = vor.u32 %v1569_v39, %v1426_v37  ;;  %v1354_v47 = vld [vmem:[#allocation5 + $0x30] sm:$0xf] }
  0x60   : > { %v1428_v43 = vld [vmem:[#allocation5 + $0xc8] sm:$0xf0]  ;;  %674 = vmatpush.bf16.msra.mxu0 %v1371_v29  ;;  %v1367_v46 = vor.u32 %v1552_v40, %v1364_v41  ;;  %v1551_v48 = vld [vmem:[#allocation5 + $0x34] sm:$0xf0]  ;;  %v1418_v49 = vld [vmem:[#allocation5 + $0xb0] sm:$0xf] }
  0x61   : > { %723 = vmatpush.bf16.msra.mxu1 %v1435_v33  ;;  %v1431_v50 = vor.u32 %v1568_v42, %v1428_v43  ;;  %v1567_v51 = vld [vmem:[#allocation5 + $0xb4] sm:$0xf0]  ;;  %v1550_v52 = vld [vmem:[#allocation5 + $0x34] sm:$0xf]  ;;  %v1356_v53 = vld [vmem:[#allocation5 + $0x38] sm:$0xf0]  ;;  %v1355_v56 = vor.u32 %v1551_v48, %v1354_v47 }
  0x62   : > { %772 = vmatpush.bf16.msra.mxu2 %v1375_v34  ;;  %v1566_v54 = vld [vmem:[#allocation5 + $0xb4] sm:$0xf]  ;;  %v1420_v55 = vld [vmem:[#allocation5 + $0xb8] sm:$0xf0]  ;;  %v1419_v57 = vor.u32 %v1567_v51, %v1418_v49  ;;  %v1359_v58 = vor.u32 %v1550_v52, %v1356_v53  ;;  %v1346_v59 = vld [vmem:[#allocation5 + $0x20] sm:$0xf] }
  0x63   : > { %821 = vmatpush.bf16.msra.mxu3 %v1439_v38  ;;  %v1549_v60 = vld [vmem:[#allocation5 + $0x24] sm:$0xf0]  ;;  %v1410_v61 = vld [vmem:[#allocation5 + $0xa0] sm:$0xf]  ;;  %v1423_v62 = vor.u32 %v1566_v54, %v1420_v55  ;;  %v1548_v0 = vld [vmem:[#allocation5 + $0x24] sm:$0xf] }
  0x64   : > { %675 = vmatpush.bf16.msra.mxu0 %v1363_v44  ;;  %v1565_v63 = vld [vmem:[#allocation5 + $0xa4] sm:$0xf0]  ;;  %v1348_v1 = vld [vmem:[#allocation5 + $0x28] sm:$0xf0]  ;;  %v1564_v2 = vld [vmem:[#allocation5 + $0xa4] sm:$0xf]  ;;  %v1347_v4 = vor.u32 %v1549_v60, %v1346_v59 }
  0x65   : > { %724 = vmatpush.bf16.msra.mxu1 %v1427_v45  ;;  %v1412_v3 = vld [vmem:[#allocation5 + $0xa8] sm:$0xf0]  ;;  %v1411_v5 = vor.u32 %v1565_v63, %v1410_v61  ;;  %v1351_v6 = vor.u32 %v1548_v0, %v1348_v1  ;;  %v1338_v7 = vld [vmem:[#allocation5 + $0x10] sm:$0xf]  ;;  %v1547_v8 = vld [vmem:[#allocation5 + $0x14] sm:$0xf0] }
  0x66   : > { %773 = vmatpush.bf16.msra.mxu2 %v1367_v46  ;;  %v1402_v9 = vld [vmem:[#allocation5 + $0x90] sm:$0xf]  ;;  %v1415_v10 = vor.u32 %v1564_v2, %v1412_v3  ;;  %v1563_v11 = vld [vmem:[#allocation5 + $0x94] sm:$0xf0]  ;;  %v1546_v12 = vld [vmem:[#allocation5 + $0x14] sm:$0xf]  ;;  %v1339_v16 = vor.u32 %v1547_v8, %v1338_v7 }
  0x67   : > { %822 = vmatpush.bf16.msra.mxu3 %v1431_v50  ;;  %v1340_v13 = vld [vmem:[#allocation5 + $0x18] sm:$0xf0]  ;;  %v1562_v14 = vld [vmem:[#allocation5 + $0x94] sm:$0xf]  ;;  %v1330_v17 = vld [vmem:[#allocation5] sm:$0xf]  ;;  %v1403_v19 = vor.u32 %v1563_v11, %v1402_v9 }
  0x68   : > { %676 = vmatpush.bf16.msra.mxu0 %v1355_v56  ;;  %v1404_v15 = vld [vmem:[#allocation5 + $0x98] sm:$0xf0]  ;;  %v1545_v18 = vld [vmem:[#allocation5 + $0x4] sm:$0xf0]  ;;  %v1343_v20 = vor.u32 %v1546_v12, %v1340_v13  ;;  %v1394_v21 = vld [vmem:[#allocation5 + $0x80] sm:$0xf] }
  0x69   : > { %725 = vmatpush.bf16.msra.mxu1 %v1419_v57  ;;  %v1561_v22 = vld [vmem:[#allocation5 + $0x84] sm:$0xf0]  ;;  %v1544_v23 = vld [vmem:[#allocation5 + $0x4] sm:$0xf]  ;;  %v1407_v24 = vor.u32 %v1562_v14, %v1404_v15  ;;  %v1332_v25 = vld [vmem:[#allocation5 + $0x8] sm:$0xf0]  ;;  %v1331_v31 = vor.u32 %v1545_v18, %v1330_v17 }
  0x6a   : > { %774 = vmatpush.bf16.msra.mxu2 %v1359_v58  ;;  %v1560_v26 = vld [vmem:[#allocation5 + $0x84] sm:$0xf]  ;;  %v1396_v27 = vld [vmem:[#allocation5 + $0x88] sm:$0xf0]  ;;  %v1266_v28 = vld [vmem:[%s2065_s13] sm:$0xf]  ;;  %v1395_v35 = vor.u32 %v1561_v22, %v1394_v21  ;;  %v1335_v36 = vor.u32 %v1544_v23, %v1332_v25 }
  0x6b   : > { %823 = vmatpush.bf16.msra.mxu3 %v1423_v62  ;;  %v1322_v29 = vld [vmem:[%s2065_s13 + $0x70] sm:$0xf]  ;;  %v1543_v30 = vld [vmem:[%s2065_s13 + $0x74] sm:$0xf0]  ;;  %v1529_v32 = vld [vmem:[%s2065_s13 + $0x4] sm:$0xf0]  ;;  %v1399_v39 = vor.u32 %v1560_v26, %v1396_v27 }
  0x6c   : > { %677 = vmatpush.bf16.msra.mxu0 %v1347_v4  ;;  %v1542_v33 = vld [vmem:[%s2065_s13 + $0x74] sm:$0xf]  ;;  %v1324_v34 = vld [vmem:[%s2065_s13 + $0x78] sm:$0xf0]  ;;  %v1528_v37 = vld [vmem:[%s2065_s13 + $0x4] sm:$0xf]  ;;  %v2092_v40 = vor.u32 %v1543_v30, %v1322_v29  ;;  %v2094_v41 = vor.u32 %v1529_v32, %v1266_v28 }
  0x6d   : > { %726 = vmatpush.bf16.msra.mxu1 %v1411_v5  ;;  %v1268_v38 = vld [vmem:[%s2065_s13 + $0x8] sm:$0xf0]  ;;  %v2096_v42 = vor.u32 %v1542_v33, %v1324_v34  ;;  %v1314_v44 = vld [vmem:[%s2065_s13 + $0x60] sm:$0xf]  ;;  %v1541_v45 = vld [vmem:[%s2065_s13 + $0x64] sm:$0xf0] }
  0x6e   : > { %775 = vmatpush.bf16.msra.mxu2 %v1351_v6  ;;  %v2098_v43 = vor.u32 %v1528_v37, %v1268_v38  ;;  %v1540_v46 = vld [vmem:[%s2065_s13 + $0x64] sm:$0xf]  ;;  %v1316_v47 = vld [vmem:[%s2065_s13 + $0x68] sm:$0xf0]  ;;  %v2109_v48 = vor.u32 %v1541_v45, %v1314_v44  ;;  %v1306_v50 = vld [vmem:[%s2065_s13 + $0x50] sm:$0xf] }
  0x6f   : > { %824 = vmatpush.bf16.msra.mxu3 %v1415_v10  ;;  %v2112_v49 = vor.u32 %v1540_v46, %v1316_v47  ;;  %v1539_v51 = vld [vmem:[%s2065_s13 + $0x54] sm:$0xf0]  ;;  %v1538_v52 = vld [vmem:[%s2065_s13 + $0x54] sm:$0xf]  ;;  %v1308_v53 = vld [vmem:[%s2065_s13 + $0x58] sm:$0xf0] }
  0x70   : > { %678 = vmatpush.bf16.msra.mxu0 %v1339_v16  ;;  %v1307_v54 = vor.u32 %v1539_v51, %v1306_v50  ;;  %v1311_v55 = vor.u32 %v1538_v52, %v1308_v53  ;;  %v1274_v56 = vld [vmem:[%s2065_s13 + $0x10] sm:$0xf]  ;;  %v1531_v57 = vld [vmem:[%s2065_s13 + $0x14] sm:$0xf0]  ;;  %v1530_v58 = vld [vmem:[%s2065_s13 + $0x14] sm:$0xf] }
  0x71   : > { %727 = vmatpush.bf16.msra.mxu1 %v1403_v19  ;;  %v1276_v59 = vld [vmem:[%s2065_s13 + $0x18] sm:$0xf0]  ;;  %v1275_v60 = vor.u32 %v1531_v57, %v1274_v56  ;;  %v1298_v62 = vld [vmem:[%s2065_s13 + $0x40] sm:$0xf]  ;;  %v1537_v63 = vld [vmem:[%s2065_s13 + $0x44] sm:$0xf0] }
  0x72   : > { %776 = vmatpush.bf16.msra.mxu2 %v1343_v20  ;;  %v1279_v61 = vor.u32 %v1530_v58, %v1276_v59  ;;  %v1536_v0 = vld [vmem:[%s2065_s13 + $0x44] sm:$0xf]  ;;  %v1299_v1 = vor.u32 %v1537_v63, %v1298_v62  ;;  %v1300_v2 = vld [vmem:[%s2065_s13 + $0x48] sm:$0xf0]  ;;  %v1290_v3 = vld [vmem:[%s2065_s13 + $0x30] sm:$0xf] }
  0x73   : > { %825 = vmatpush.bf16.msra.mxu3 %v1407_v24  ;;  %v1535_v4 = vld [vmem:[%s2065_s13 + $0x34] sm:$0xf0]  ;;  %v1303_v5 = vor.u32 %v1536_v0, %v1300_v2  ;;  %v1534_v6 = vld [vmem:[%s2065_s13 + $0x34] sm:$0xf]  ;;  %v1292_v7 = vld [vmem:[%s2065_s13 + $0x38] sm:$0xf0] }
  0x74   : > { %679 = vmatpush.bf16.msra.mxu0 %v1331_v31  ;;  %v1291_v8 = vor.u32 %v1535_v4, %v1290_v3  ;;  %v1282_v9 = vld [vmem:[%s2065_s13 + $0x20] sm:$0xf]  ;;  %v1533_v10 = vld [vmem:[%s2065_s13 + $0x24] sm:$0xf0]  ;;  %v1295_v11 = vor.u32 %v1534_v6, %v1292_v7  ;;  %v1532_v12 = vld [vmem:[%s2065_s13 + $0x24] sm:$0xf] }
  0x75   : > { %728 = vmatpush.bf16.msra.mxu1 %v1395_v35  ;;  %v1284_v13 = vld [vmem:[%s2065_s13 + $0x28] sm:$0xf0]  ;;  %v1283_v14 = vor.u32 %v1533_v10, %v1282_v9  ;;  %v1583_v16 = vld [vmem:[#allocation8 + $0x38] sm:$0xff]  ;;  %v1582_v18 = vld [vmem:[#allocation8 + $0x30] sm:$0xff]  ;;  %s2160_s12 = scalar_lea.vmem [#allocation9], %s1259_s7  ;;  %s1593_s16 = sshll.u32 %s1941_s28, 7 }
  0x76   : > { %777 = vmatpush.bf16.msra.mxu2 %v1335_v36  ;;  %v1287_v15 = vor.u32 %v1532_v12, %v1284_v13  ;;  %v1591_v17 = vld [vmem:[#allocation8 + $0x78] sm:$0xff]  ;;  %v1590_v19 = vld [vmem:[#allocation8 + $0x70] sm:$0xff]  ;;  %v1581_v27 = vld [vmem:[#allocation8 + $0x28] sm:$0xff]  ;;  %s1110_s10 = scalar_lea.hbm %s2257_s6, %s1593_s16  ;;  %s1111_s9 = sshll.u32 %s2160_s12, 4  ;;  %s1112_s9 = int_to_ptr.vmem [resolvable:$true] %s1111_s9 }
  0x77   : > { %826 = vmatpush.bf16.msra.mxu3 %v1399_v39  ;;  %680 = vmatmul.bf16.vlgmr.msra.gmra.mxu0 %v2094_v41  ;;  %v426_v20 = vld [vmem:[%s2253_s2] sm:$0x3]  ;;  %v1589_v28 = vld [vmem:[#allocation8 + $0x68] sm:$0xff]  ;;  %v1580_v47 = vld [vmem:[#allocation8 + $0x20] sm:$0xff]  ;;  %s1113_s1 = sshll.u32 %s1110_s10, 4  ;;  %s1094_s14 = scalar_lea.sflag [#allocation4], %s2060_s8  ;;  %s1114_s1 = int_to_ptr.hbm [resolvable:$true] %s1113_s1 }
  0x78   : > { %901 = vmatpush.bf16.msrb.mxu0 %v2092_v40  ;;  %729 = vmatmul.bf16.vlgmr.msra.gmra.mxu1 %v2098_v43  ;;  %v900_v22 = vld [vmem:[%s327_s0] sm:$0x1]  ;;  %v2151_v24 = vperm.slane %v426_v20, 0  ;;  %v2153_v25 = vperm.slane %v426_v20, 1  ;;  %s1806_s17 = sshra.s32 %s1114_s1, 4  ;;  %s1812_s23 = scalar_lea.hbm %s2257_s6, 256  ;;  %s1807_s17 = int_to_ptr.hbm [resolvable:$true] %s1806_s17 }
  0x79   : > { %914 = vmatpush.bf16.msrb.mxu1 %v2096_v42  ;;  %778 = vmatmul.bf16.vlgmr.msra.gmra.mxu2 %v2094_v41  ;;  %v1579_v3 = vld [vmem:[#allocation8 + $0x18] sm:$0xff]  ;;  %s1808_s15 = scalar_lea.hbm %s1807_s17, 128  ;;  %p1813_p2 = scmp.lt.s32.totalorder %s1807_s17, %s2257_s6 }
  0x7a   : > { %827 = vmatmul.bf16.vlgmr.msra.gmra.mxu3 %v2098_v43  ;;  %1066 = vmatpush.bf16.msrb.mxu2 %v1583_v16  ;;  %v1587_v4 = vld [vmem:[#allocation8 + $0x58] sm:$0xff]  ;;  %p1809_p4 = scmp.ne.s32.totalorder %s1807_s17, %s1808_s15  ;;  %p1814_p10 = scmp.lt.s32.totalorder %s1812_s23, %s1808_s15 }
  0x7b   : > { %1079 = vmatpush.bf16.msrb.mxu3 %v1591_v17 }
  0x7c   : > { %902 = vmatpush.bf16.msrb.mxu0 %v2109_v48  ;;  %p1810_p1 = pnand %p1809_p4, %p1996_p7  ;;  %p1815_p13 = por %p1814_p10, %p1813_p2 }
  0x7d   : > { %915 = vmatpush.bf16.msrb.mxu1 %v2112_v49 }
  0x7e   : > { %1067 = vmatpush.bf16.msrb.mxu2 %v1582_v18  ;;  %p1811_p11 = pneg %p1810_p1 }
  0x7f   : > { %1080 = vmatpush.bf16.msrb.mxu3 %v1590_v19 }
  0x80   : > { %903 = vmatpush.bf16.msrb.mxu0 %v1307_v54  ;;  %p1816_p0 = pnand %p1815_p13, %p1811_p11 }
  0x81   : > { %916 = vmatpush.bf16.msrb.mxu1 %v1311_v55 }
  0x82   : > { %1068 = vmatpush.bf16.msrb.mxu2 %v1581_v27 }
  0x83   : > { %1081 = vmatpush.bf16.msrb.mxu3 %v1589_v28 }
  0x84   : > { %904 = vmatpush.bf16.msrb.mxu0 %v1299_v1 }
  0x85   : > { %917 = vmatpush.bf16.msrb.mxu1 %v1303_v5 }
  0x86   : > { %1069 = vmatpush.bf16.msrb.mxu2 %v1580_v47 }
  0x87   : > { %685 = vmatmul.bf16.gmra.mxu0 %v1275_v60 }
  0x88   : > { %734 = vmatmul.bf16.gmra.mxu1 %v1279_v61  ;;  %905 = vmatpush.bf16.msrb.mxu0 %v1291_v8 }
  0x89   : > { %783 = vmatmul.bf16.gmra.mxu2 %v1275_v60  ;;  %918 = vmatpush.bf16.msrb.mxu1 %v1295_v11 }
  0x8a   : > { %832 = vmatmul.bf16.gmra.mxu3 %v1279_v61  ;;  %1070 = vmatpush.bf16.msrb.mxu2 %v1579_v3 }
  0x8c   : > { %906 = vmatpush.bf16.msrb.mxu0 %v1283_v14 }
  0x8d   : > { %919 = vmatpush.bf16.msrb.mxu1 %v1287_v15 }
  0x90   : > { %907 = vmatpush.bf16.msrb.mxu0 %v1275_v60 }
  0x91   : > { %920 = vmatpush.bf16.msrb.mxu1 %v1279_v61 }
  0x94   : > { %908 = vmatpush.bf16.msrb.mxu0 %v2094_v41 }
  0x95   : > { %921 = vmatpush.bf16.msrb.mxu1 %v2098_v43 }
  0x97   : > { %690 = vmatmul.bf16.gmra.mxu0 %v1283_v14 }
  0x98   : > { %739 = vmatmul.bf16.gmra.mxu1 %v1287_v15 }
  0x99   : > { %788 = vmatmul.bf16.gmra.mxu2 %v1283_v14 }
  0x9a   : > { %837 = vmatmul.bf16.gmra.mxu3 %v1287_v15 }
  0xa7   : > { %695 = vmatmul.bf16.gmra.mxu0 %v1291_v8 }
  0xa8   : > { %744 = vmatmul.bf16.gmra.mxu1 %v1295_v11 }
  0xa9   : > { %793 = vmatmul.bf16.gmra.mxu2 %v1291_v8 }
  0xaa   : > { %842 = vmatmul.bf16.gmra.mxu3 %v1295_v11 }
  0xb7   : > { %700 = vmatmul.bf16.gmra.mxu0 %v1299_v1 }
  0xb8   : > { %749 = vmatmul.bf16.gmra.mxu1 %v1303_v5 }
  0xb9   : > { %798 = vmatmul.bf16.gmra.mxu2 %v1299_v1 }
  0xba   : > { %847 = vmatmul.bf16.gmra.mxu3 %v1303_v5 }
  0xc7   : > { %705 = vmatmul.bf16.gmra.mxu0 %v1307_v54 }
  0xc8   : > { %754 = vmatmul.bf16.gmra.mxu1 %v1311_v55 }
  0xc9   : > { %803 = vmatmul.bf16.gmra.mxu2 %v1307_v54 }
  0xca   : > { %852 = vmatmul.bf16.gmra.mxu3 %v1311_v55 }
  0xd7   : > { %710 = vmatmul.bf16.gmra.mxu0 %v2109_v48 }
  0xd8   : > { %759 = vmatmul.bf16.gmra.mxu1 %v2112_v49 }
  0xd9   : > { %808 = vmatmul.bf16.gmra.mxu2 %v2109_v48  ;;  %v1588_v48 = vld [vmem:[#allocation8 + $0x60] sm:$0xff] }
  0xda   : > { %857 = vmatmul.bf16.gmra.mxu3 %v2112_v49 }
  0xdb   : > { %1082 = vmatpush.bf16.msrb.mxu3 %v1588_v48 }
  0xdf   : > { %1083 = vmatpush.bf16.msrb.mxu3 %v1587_v4 }
  0xe7   : > { %715 = vmatmul.bf16.gmra.mxu0 %v2092_v40 }
  0xe8   : > { %764 = vmatmul.bf16.gmra.mxu1 %v2096_v42 }
  0xe9   : > { %813 = vmatmul.bf16.gmra.mxu2 %v2092_v40 }
  0xea   : > { %862 = vmatmul.bf16.gmra.mxu3 %v2096_v42 }
  0xf4   : > { %v681_v21 = vpop.f32.mrf.mxu0 }
  0xf5   : > { %v730_v23 = vpop.f32.mrf.mxu1  ;;  %v682_v26 = vadd.f32 %v681_v21, %v2151_v24 }
  0xf7   : > { %909 = vmatmul.bf16.vlgmr.msrb.gmra.mxu0 %v900_v22  ;;  %v731_v34 = vadd.f32 %v730_v23, %v682_v26  ;;  %v1578_v23 = vld [vmem:[#allocation8 + $0x10] sm:$0xff] }
  0xf8   : > { %922 = vmatmul.bf16.vlgmr.msrb.gmra.mxu1 %v900_v22  ;;  %v1586_v26 = vld [vmem:[#allocation8 + $0x50] sm:$0xff]  ;;  %1071 = vmatpush.bf16.msrb.mxu2 %v1578_v23 }
  0xf9   : > { %1084 = vmatpush.bf16.msrb.mxu3 %v1586_v26 }
  0xfc   : > { %v779_v29 = vpop.f32.mrf.mxu2  ;;  %v683_v31 = vpop.f32.mrf.mxu0 }
  0xfd   : > { %v780_v30 = vadd.f32 %v779_v29, %v2153_v25  ;;  %v828_v32 = vpop.f32.mrf.mxu3  ;;  %v732_v33 = vpop.f32.mrf.mxu1  ;;  %v684_v37 = vadd.f32 %v683_v31, %v2151_v24 }
  0xff   : > { %v829_v35 = vadd.f32 %v828_v32, %v780_v30  ;;  %v733_v43 = vadd.f32 %v732_v33, %v684_v37 }
 0x101   : > { %v868_v36 = vpack.c.bf16 %v829_v35, %v731_v34 }
 0x103   : > { %884 = vst [vmem:[%s2160_s12] sm:$0xff] %v868_v36 }
 0x104   : > { %v781_v38 = vpop.f32.mrf.mxu2  ;;  %v686_v40 = vpop.f32.mrf.mxu0 }
 0x105   : > { %v782_v39 = vadd.f32 %v781_v38, %v2153_v25  ;;  %v830_v41 = vpop.f32.mrf.mxu3  ;;  %v735_v42 = vpop.f32.mrf.mxu1  ;;  %v687_v46 = vadd.f32 %v686_v40, %v2151_v24 }
 0x107   : > { %v831_v44 = vadd.f32 %v830_v41, %v782_v39  ;;  %v736_v54 = vadd.f32 %v735_v42, %v687_v46  ;;  %v1585_v46 = vld [vmem:[#allocation8 + $0x48] sm:$0xff] }
 0x108   : > { %1085 = vmatpush.bf16.msrb.mxu3 %v1585_v46 }
 0x109   : > { %v869_v45 = vpack.c.bf16 %v831_v44, %v733_v43 }
 0x10b   : > { %885 = vst [vmem:[%s2160_s12 + $0x8] sm:$0xff] %v869_v45  ;;  %v1577_v45 = vld [vmem:[#allocation8 + $0x8] sm:$0xff] }
 0x10c   : > { %v784_v49 = vpop.f32.mrf.mxu2  ;;  %v688_v51 = vpop.f32.mrf.mxu0  ;;  %1072 = vmatpush.bf16.msrb.mxu2 %v1577_v45 }
 0x10d   : > { %v785_v50 = vadd.f32 %v784_v49, %v2153_v25  ;;  %v833_v52 = vpop.f32.mrf.mxu3  ;;  %v737_v53 = vpop.f32.mrf.mxu1  ;;  %v689_v57 = vadd.f32 %v688_v51, %v2151_v24 }
 0x10f   : > { %v834_v55 = vadd.f32 %v833_v52, %v785_v50  ;;  %v738_v63 = vadd.f32 %v737_v53, %v689_v57 }
 0x111   : > { %v870_v56 = vpack.c.bf16 %v834_v55, %v736_v54 }
 0x113   : > { %886 = vst [vmem:[%s2160_s12 + $0x10] sm:$0xff] %v870_v56 }
 0x114   : > { %v786_v58 = vpop.f32.mrf.mxu2  ;;  %v691_v60 = vpop.f32.mrf.mxu0 }
 0x115   : > { %v787_v59 = vadd.f32 %v786_v58, %v2153_v25  ;;  %v835_v61 = vpop.f32.mrf.mxu3  ;;  %v740_v62 = vpop.f32.mrf.mxu1  ;;  %v692_v2 = vadd.f32 %v691_v60, %v2151_v24 }
 0x117   : > { %v836_v0 = vadd.f32 %v835_v61, %v787_v59  ;;  %v741_v10 = vadd.f32 %v740_v62, %v692_v2  ;;  %v1584_v2 = vld [vmem:[#allocation8 + $0x40] sm:$0xff] }
 0x118   : > { %1086 = vmatpush.bf16.msrb.mxu3 %v1584_v2 }
 0x119   : > { %v871_v1 = vpack.c.bf16 %v836_v0, %v738_v63 }
 0x11b   : > { %887 = vst [vmem:[%s2160_s12 + $0x18] sm:$0xff] %v871_v1  ;;  %v1576_v1 = vld [vmem:[#allocation8] sm:$0xff] }
 0x11c   : > { %v789_v5 = vpop.f32.mrf.mxu2  ;;  %v693_v7 = vpop.f32.mrf.mxu0  ;;  %1073 = vmatpush.bf16.msrb.mxu2 %v1576_v1 }
 0x11d   : > { %v790_v6 = vadd.f32 %v789_v5, %v2153_v25  ;;  %v838_v8 = vpop.f32.mrf.mxu3  ;;  %v742_v9 = vpop.f32.mrf.mxu1  ;;  %v694_v13 = vadd.f32 %v693_v7, %v2151_v24 }
 0x11f   : > { %v839_v11 = vadd.f32 %v838_v8, %v790_v6  ;;  %v743_v19 = vadd.f32 %v742_v9, %v694_v13 }
 0x121   : > { %v872_v12 = vpack.c.bf16 %v839_v11, %v741_v10 }
 0x123   : > { %888 = vst [vmem:[%s2160_s12 + $0x20] sm:$0xff] %v872_v12 }
 0x124   : > { %v791_v14 = vpop.f32.mrf.mxu2  ;;  %v696_v16 = vpop.f32.mrf.mxu0 }
 0x125   : > { %v792_v15 = vadd.f32 %v791_v14, %v2153_v25  ;;  %v840_v17 = vpop.f32.mrf.mxu3  ;;  %v745_v18 = vpop.f32.mrf.mxu1  ;;  %v697_v22 = vadd.f32 %v696_v16, %v2151_v24 }
 0x127   : > { %v841_v20 = vadd.f32 %v840_v17, %v792_v15  ;;  %v746_v32 = vadd.f32 %v745_v18, %v697_v22 }
 0x129   : > { %v873_v21 = vpack.c.bf16 %v841_v20, %v743_v19 }
 0x12b   : > { %889 = vst [vmem:[%s2160_s12 + $0x28] sm:$0xff] %v873_v21 }
 0x12c   : > { %v794_v27 = vpop.f32.mrf.mxu2  ;;  %v698_v29 = vpop.f32.mrf.mxu0 }
 0x12d   : > { %v795_v28 = vadd.f32 %v794_v27, %v2153_v25  ;;  %v843_v30 = vpop.f32.mrf.mxu3  ;;  %v747_v31 = vpop.f32.mrf.mxu1  ;;  %v699_v35 = vadd.f32 %v698_v29, %v2151_v24 }
 0x12f   : > { %v844_v33 = vadd.f32 %v843_v30, %v795_v28  ;;  %v748_v41 = vadd.f32 %v747_v31, %v699_v35 }
 0x131   : > { %v874_v34 = vpack.c.bf16 %v844_v33, %v746_v32 }
 0x133   : > { %890 = vst [vmem:[%s2160_s12 + $0x30] sm:$0xff] %v874_v34 }
 0x134   : > { %v796_v36 = vpop.f32.mrf.mxu2  ;;  %v701_v38 = vpop.f32.mrf.mxu0 }
 0x135   : > { %v797_v37 = vadd.f32 %v796_v36, %v2153_v25  ;;  %v845_v39 = vpop.f32.mrf.mxu3  ;;  %v750_v40 = vpop.f32.mrf.mxu1  ;;  %v702_v44 = vadd.f32 %v701_v38, %v2151_v24 }
 0x137   : > { %v846_v42 = vadd.f32 %v845_v39, %v797_v37  ;;  %v751_v52 = vadd.f32 %v750_v40, %v702_v44 }
 0x139   : > { %v875_v43 = vpack.c.bf16 %v846_v42, %v748_v41 }
 0x13b   : > { %891 = vst [vmem:[%s2160_s12 + $0x38] sm:$0xff] %v875_v43 }
 0x13c   : > { %v799_v47 = vpop.f32.mrf.mxu2  ;;  %v703_v49 = vpop.f32.mrf.mxu0 }
 0x13d   : > { %v800_v48 = vadd.f32 %v799_v47, %v2153_v25  ;;  %v848_v50 = vpop.f32.mrf.mxu3  ;;  %v752_v51 = vpop.f32.mrf.mxu1  ;;  %v704_v55 = vadd.f32 %v703_v49, %v2151_v24 }
 0x13f   : > { %v849_v53 = vadd.f32 %v848_v50, %v800_v48  ;;  %v753_v61 = vadd.f32 %v752_v51, %v704_v55 }
 0x141   : > { %v876_v54 = vpack.c.bf16 %v849_v53, %v751_v52 }
 0x143   : > { %892 = vst [vmem:[%s2160_s12 + $0x40] sm:$0xff] %v876_v54 }
 0x144   : > { %v801_v56 = vpop.f32.mrf.mxu2  ;;  %v706_v58 = vpop.f32.mrf.mxu0 }
 0x145   : > { %v802_v57 = vadd.f32 %v801_v56, %v2153_v25  ;;  %v850_v59 = vpop.f32.mrf.mxu3  ;;  %v755_v60 = vpop.f32.mrf.mxu1  ;;  %v707_v0 = vadd.f32 %v706_v58, %v2151_v24 }
 0x147   : > { %v851_v62 = vadd.f32 %v850_v59, %v802_v57  ;;  %v756_v8 = vadd.f32 %v755_v60, %v707_v0 }
 0x149   : > { %v877_v63 = vpack.c.bf16 %v851_v62, %v753_v61 }
 0x14b   : > { %893 = vst [vmem:[%s2160_s12 + $0x48] sm:$0xff] %v877_v63 }
 0x14c   : > { %v804_v3 = vpop.f32.mrf.mxu2  ;;  %v708_v5 = vpop.f32.mrf.mxu0 }
 0x14d   : > { %v805_v4 = vadd.f32 %v804_v3, %v2153_v25  ;;  %v853_v6 = vpop.f32.mrf.mxu3  ;;  %v757_v7 = vpop.f32.mrf.mxu1  ;;  %v709_v11 = vadd.f32 %v708_v5, %v2151_v24 }
 0x14f   : > { %v854_v9 = vadd.f32 %v853_v6, %v805_v4  ;;  %v758_v17 = vadd.f32 %v757_v7, %v709_v11 }
 0x151   : > { %v878_v10 = vpack.c.bf16 %v854_v9, %v756_v8 }
 0x153   : > { %894 = vst [vmem:[%s2160_s12 + $0x50] sm:$0xff] %v878_v10 }
 0x154   : > { %v806_v12 = vpop.f32.mrf.mxu2  ;;  %v711_v14 = vpop.f32.mrf.mxu0 }
 0x155   : > { %v807_v13 = vadd.f32 %v806_v12, %v2153_v25  ;;  %v855_v15 = vpop.f32.mrf.mxu3  ;;  %v760_v16 = vpop.f32.mrf.mxu1  ;;  %v712_v20 = vadd.f32 %v711_v14, %v2151_v24 }
 0x157   : > { %v856_v18 = vadd.f32 %v855_v15, %v807_v13  ;;  %v761_v28 = vadd.f32 %v760_v16, %v712_v20 }
 0x159   : > { %v879_v19 = vpack.c.bf16 %v856_v18, %v758_v17 }
 0x15b   : > { %895 = vst [vmem:[%s2160_s12 + $0x58] sm:$0xff] %v879_v19 }
 0x15c   : > { %v809_v21 = vpop.f32.mrf.mxu2  ;;  %v713_v23 = vpop.f32.mrf.mxu0 }
 0x15d   : > { %v810_v22 = vadd.f32 %v809_v21, %v2153_v25  ;;  %v858_v26 = vpop.f32.mrf.mxu3  ;;  %v762_v27 = vpop.f32.mrf.mxu1  ;;  %v714_v31 = vadd.f32 %v713_v23, %v2151_v24 }
 0x15f   : > { %v859_v29 = vadd.f32 %v858_v26, %v810_v22  ;;  %v763_v37 = vadd.f32 %v762_v27, %v714_v31 }
 0x161   : > { %v880_v30 = vpack.c.bf16 %v859_v29, %v761_v28 }
 0x163   : > { %896 = vst [vmem:[%s2160_s12 + $0x60] sm:$0xff] %v880_v30 }
 0x164   : > { %v811_v32 = vpop.f32.mrf.mxu2  ;;  %v716_v34 = vpop.f32.mrf.mxu0 }
 0x165   : > { %v812_v33 = vadd.f32 %v811_v32, %v2153_v25  ;;  %v860_v35 = vpop.f32.mrf.mxu3  ;;  %v765_v36 = vpop.f32.mrf.mxu1  ;;  %v717_v40 = vadd.f32 %v716_v34, %v2151_v24 }
 0x167   : > { %v861_v38 = vadd.f32 %v860_v35, %v812_v33  ;;  %v766_v46 = vadd.f32 %v765_v36, %v717_v40 }
 0x169   : > { %v881_v39 = vpack.c.bf16 %v861_v38, %v763_v37 }
 0x16b   : > { %897 = vst [vmem:[%s2160_s12 + $0x68] sm:$0xff] %v881_v39 }
 0x16c   : > { %v814_v41 = vpop.f32.mrf.mxu2  ;;  %v718_v43 = vpop.f32.mrf.mxu0 }
 0x16d   : > { %v815_v42 = vadd.f32 %v814_v41, %v2153_v25  ;;  %v863_v44 = vpop.f32.mrf.mxu3  ;;  %v767_v45 = vpop.f32.mrf.mxu1  ;;  %v719_v49 = vadd.f32 %v718_v43, %v2151_v24 }
 0x16f   : > { %v864_v47 = vadd.f32 %v863_v44, %v815_v42  ;;  %v768_v56 = vadd.f32 %v767_v45, %v719_v49 }
 0x171   : > { %v882_v48 = vpack.c.bf16 %v864_v47, %v766_v46 }
 0x173   : > { %898 = vst [vmem:[%s2160_s12 + $0x70] sm:$0xff] %v882_v48 }
 0x174   : > { %v816_v50 = vpop.f32.mrf.mxu2  ;;  %v910_v53 = vpop.f32.mrf.mxu0 }
 0x175   : > { %v817_v51 = vadd.f32 %v816_v50, %v2153_v25  ;;  %v865_v52 = vpop.f32.mrf.mxu3  ;;  %v927_v54 = vpack.c.bf16 %v910_v53, %v910_v53  ;;  %v923_v55 = vpop.f32.mrf.mxu1 }
 0x176   : > { %v928_v58 = vpack.c.bf16 %v923_v55, %v923_v55 }
 0x177   : > { %v866_v57 = vadd.f32 %v865_v52, %v817_v51  ;;  %1074 = vmatmul.bf16.vlgmr.msrb.gmra.mxu2 %v927_v54 }
 0x178   : > { %1087 = vmatmul.bf16.vlgmr.msrb.gmra.mxu3 %v928_v58 }
 0x179   : > { %v883_v59 = vpack.c.bf16 %v866_v57, %v768_v56 }
 0x17b   : > { %899 = vst [vmem:[%s2160_s12 + $0x78] sm:$0xff] %v883_v59 }
 0x17c   : > { %v912_v24 = vpop.f32.mrf.mxu0 }
 0x17d   : > { %v925_v60 = vpop.f32.mrf.mxu1 }
 0x17e   : > { %1819 = shalt.err (!%p1816_p0)
}
 0x17f   : > { %s1878_s8 = smov 128   ;;  %s1879_s7 = smov 8   ;;  %v964_v25 = vld [vmem:[%s2256_s5] sm:$0x1] }
 0x180   : > { %1606 = dma.vmem_to_hbm [thread:$0]  (%p1996_p7), %s1112_s9, 2048, %s1114_s1, %s1094_s14, %s1878_s8, %s1878_s8, %s1879_s7  }
 0x181   : > { %p2291_p3 = pmov %p2290_p5  ;;  %p374_p8 = scmp.lt.s32.totalorder %s1941_s28, 1 }
 0x182   : > { %s2292_s22 = sld [smem:[#allocation22_spill]] }
 0x183   : > { %s962_s11 = scalar_select %p2291_p3, 1, 0 }
 0x184   : > { %s2302_s28 = smov (!%p374_p8, %s1941_s28), 1 }
 0x185   : > { %s963_s13 = scvt.s32.f32 %s962_s11  ;;  %s1263_s30 = sshll.u32 %s2302_s28, 1 }
 0x187   : > { %v965_v61 = vstv %s963_s13 }
 0x188   : > { %v966_v62 = vmul.f32 %v965_v61, %v964_v25  ;;  %s377_s20 = scalar_lea.vmem %s2292_s22, %s1263_s30 }
 0x18a   : > { %v968_v63 = vperm.slane %v966_v62, 0 }
 0x1fa   : > { %v1075_v0 = vpop.f32.mrf.mxu2 }
 0x1fb   : > { %v1076_v1 = vadd.f32 %v1075_v0, %v968_v63  ;;  %v1088_v2 = vpop.f32.mrf.mxu3 }
 0x1fd   : > { %v1089_v3 = vadd.f32 %v1088_v2, %v1076_v1 }
 0x1ff   : > { %1092 = vst [vmem:[%s377_s20] sm:$0x3] %v1089_v3 }
 0x202   : > { %v1077_v4 = vpop.f32.mrf.mxu2 }
 0x203   : > { %v1090_v5 = vpop.f32.mrf.mxu3 }
 0x204 PF: > { %s2293_s21 = sld [smem:[#allocation15_spill]]  ;;  %p2295_p7 = scmp.ge.s32.totalorder %s1870_s27, 2 }
 0x206   : > { %p1623_p9 = pnand %p2295_p7, %p1955_p6 }
 0x208   : > { %p1624_p12 = pneg %p1623_p9 }
 0x20a   : > { %s1131_s9 = sand.u32 1, %s2293_s21  }
 0x20b   : > { %s1132_s28 = scalar_lea.sflag [#allocation4], %s1131_s9 }
 0x20c   : > { %1853 = dma.done.wait (%p1624_p12), %s1132_s28, 2048  }
 0x20d   : > { %1855 = vsyncadd (%p1624_p12), %s1132_s28, 4294965248  ;;  %s2296_s27 = sld [smem:[#allocation17_spill]]  ;;  %s2298_s24 = smov %s1862_s25 }
 0x20e   : > { %s2297_s1 = sld [smem:[#allocation18_spill]]  ;;  %s2299_s25 = smov %s1866_s26 }
 0x213   : > { %p22_p5 = scmp.ge.s32.totalorder %s2296_s27, 4  }
 0x214   : > { %s2300_s26 = smov %s2297_s1 }
 0x215   :  { %24 = sbr.rel (!%p22_p5) target bundleno = 11 (0xb), region = 120 }
 0x21a   :  { %1145 = vsyncpa [#allocation3], 1 }
 0x21b   :  { %1147 = vsyncpa [#allocation3 + $0x1], 1 }
 0x21c   :  { %1148 = vsyncpa [#allocation6], 1 }
 0x21d   :  { %1149 = vsyncpa [#allocation4], 1 }
 0x21e   :  { %1151 = vsyncpa [#allocation4 + $0x1], 1 }

</bundles_post_ra>
